<compile_context>
chip_gen: v6e
topology: v6e:2x2x1
jax: 0.10.0
libtpu: 0.0.40
codegen_flags: <defaults>
</compile_context>

<pallas_src>
import jax
import jax.numpy as jnp
from jax.experimental import pallas as pl
from jax.experimental.pallas import tpu as pltpu

LANE = 128
SUBLANE_BF16 = 16
NEG_BIG = -1e30  # bias for padded class lanes -> exp underflows to exactly 0


def _round_up(x, m):
    return (x + m - 1) // m * m


def _pad2(a, rows, cols, fill=0.0):
    return jnp.pad(a, ((0, rows - a.shape[0]), (0, cols - a.shape[1])),
                   constant_values=fill)


# ---------------------------------------------------------------------------
# kernel body: whole MLP fused, one batch tile per grid step
# ---------------------------------------------------------------------------
def mlp_kernel(x_ref, w1_ref, b1_ref, w2_ref, b2_ref, w3_ref, b3_ref, out_ref):
    x = x_ref[...]

    # layer 1: Linear + ReLU   (dropout p=0.0 -> identity)
    h = jnp.dot(x, w1_ref[...], preferred_element_type=jnp.float32) + b1_ref[...]
    h = jnp.maximum(h, 0.0)

    # layer 2: Linear + ReLU   (dropout p=0.0 -> identity)
    h = jnp.dot(h.astype(w2_ref.dtype), w2_ref[...],
                preferred_element_type=jnp.float32) + b2_ref[...]
    h = jnp.maximum(h, 0.0)

    # layer 3: Linear + stable softmax over the (lane-padded) class axis.
    # Padded classes carry a -1e30 bias, so exp() == 0 there and neither the
    # row max nor the denominator is perturbed.
    logits = jnp.dot(h.astype(w3_ref.dtype), w3_ref[...],
                     preferred_element_type=jnp.float32) + b3_ref[...]
    m = jnp.max(logits, axis=1, keepdims=True)
    e = jnp.exp(logits - m)
    denom = jnp.sum(e, axis=1, keepdims=True)
    out_ref[...] = (e * pl.reciprocal(denom, approx=True)).astype(out_ref.dtype)


# ---------------------------------------------------------------------------
# tiling / VMEM policy
# ---------------------------------------------------------------------------
def _choose_batch_tile(batch):
    """Pick (tile_rows, padded_batch).  Single block only for tiny batches;
    otherwise an even number of grid steps with <=512-row tiles."""
    b16 = _round_up(max(batch, 1), SUBLANE_BF16)
    if b16 < 32:
        return b16, b16
    target = 512
    pairs = max(1, -(-b16 // (2 * target)))   # ceil(b16 / (2*target))
    steps = 2 * pairs                          # even -> balanced across 2 TCs (v7x)
    tm = _round_up(-(-b16 // steps), SUBLANE_BF16)
    return tm, steps * tm


def _vmem_capacity_bytes():
    try:
        return int(pltpu.get_tpu_info().vmem_capacity_bytes)
    except Exception:
        return 64 << 20  # conservative default (v7x per-TensorCore VMEM)


def _vmem_plan(tm, d_p, h1_p, h2_p, c_p, compute_dtype, out_dtype):
    """Returns (vmem_limit_bytes, single_buffer_weights)."""
    isz = jnp.dtype(compute_dtype).itemsize
    osz = jnp.dtype(out_dtype).itemsize
    w_bytes = (d_p * h1_p + h1_p * h2_p + h2_p * c_p) * isz + (h1_p + h2_p + c_p) * 4
    io_bytes = 2 * tm * (d_p * isz + c_p * osz)          # double-buffered x / out tiles
    act_bytes = tm * (h1_p + h2_p + 2 * c_p) * 4         # f32 intermediates in the body
    headroom = 16 << 20

    usable = max(min(_vmem_capacity_bytes() - (8 << 20), 110 << 20), 32 << 20)

    single_buffer_weights = (2 * w_bytes + io_bytes + act_bytes + headroom) > usable
    w_mult = 1 if single_buffer_weights else 2
    needed = w_mult * w_bytes + io_bytes + act_bytes + headroom
    vmem_limit = int(min(max(needed, 32 << 20), usable))
    return vmem_limit, single_buffer_weights


# ---------------------------------------------------------------------------
# parameter preparation (done ONCE) + jitted forward
# ---------------------------------------------------------------------------
def prepare_params(w1, b1, w2, b2, w3, b3, *, compute_dtype=jnp.bfloat16):
    """Pad every feature axis to a multiple of 128 and cast weights to the MXU
    compute dtype once; the result is reused across every forward call."""
    d_in, h1 = w1.shape
    h2 = w2.shape[1]
    c = w3.shape[1]
    d_p, h1_p, h2_p, c_p = (_round_up(v, LANE) for v in (d_in, h1, h2, c))

    b1 = jnp.reshape(b1, (1, -1))
    b2 = jnp.reshape(b2, (1, -1))
    b3 = jnp.reshape(b3, (1, -1))

    return (
        _pad2(w1, d_p, h1_p).astype(compute_dtype),
        _pad2(b1, 1, h1_p).astype(jnp.float32),
        _pad2(w2, h1_p, h2_p).astype(compute_dtype),
        _pad2(b2, 1, h2_p).astype(jnp.float32),
        _pad2(w3, h2_p, c_p).astype(compute_dtype),
        _pad2(b3, 1, c_p, fill=NEG_BIG).astype(jnp.float32),
    )


def _forward_padded(x, w1_p, b1_p, w2_p, b2_p, w3_p, b3_p, *, num_classes, out_dtype):
    batch = x.shape[0]
    d_p, h1_p = w1_p.shape
    h2_p = w2_p.shape[1]
    c_p = w3_p.shape[1]
    compute_dtype = w1_p.dtype

    tm, b_p = _choose_batch_tile(batch)
    x_p = _pad2(x, b_p, d_p).astype(compute_dtype)  # zero rows/cols: no-op in dot

    vmem_limit, single_buffer_weights = _vmem_plan(
        tm, d_p, h1_p, h2_p, c_p, compute_dtype, out_dtype)

    def wspec(shape):
        # Constant block index -> fetched once.  Single-buffer it when the
        # double-buffered weight footprint would not fit VMEM (v7x, large H).
        if single_buffer_weights:
            return pl.BlockSpec(shape, lambda i: (0, 0),
                                pipeline_mode=pl.Buffered(1))
        return pl.BlockSpec(shape, lambda i: (0, 0))

    out_p = pl.pallas_call(
        mlp_kernel,
        out_shape=jax.ShapeDtypeStruct((b_p, c_p), out_dtype),
        grid_spec=pltpu.PrefetchScalarGridSpec(
            num_scalar_prefetch=0,
            grid=(b_p // tm,),
            in_specs=[
                pl.BlockSpec((tm, d_p), lambda i: (i, 0)),   # x tile (batch-tiled)
                wspec((d_p, h1_p)),                          # W1 (resident)
                wspec((1, h1_p)),                            # b1
                wspec((h1_p, h2_p)),                         # W2 (resident)
                wspec((1, h2_p)),                            # b2
                wspec((h2_p, c_p)),                          # W3 (resident)
                wspec((1, c_p)),                             # b3 (padded lanes = -1e30)
            ],
            out_specs=pl.BlockSpec((tm, c_p), lambda i: (i, 0)),
        ),
        compiler_params=pltpu.CompilerParams(
            dimension_semantics=("parallel",),
            vmem_limit_bytes=vmem_limit,
        ),
    )(x_p, w1_p, b1_p, w2_p, b2_p, w3_p, b3_p)

    return out_p[:batch, :num_classes]


def make_three_layer_mlp(w1, b1, w2, b2, w3, b3, *,
                         compute_dtype=jnp.bfloat16, out_dtype=jnp.float32):
    """Pad/cast parameters once; return a jitted forward(x) closure."""
    padded = prepare_params(w1, b1, w2, b2, w3, b3, compute_dtype=compute_dtype)
    num_classes = w3.shape[1]

    @jax.jit
    def forward(x):
        return _forward_padded(x, *padded, num_classes=num_classes,
                               out_dtype=out_dtype)

    return forward


# ---------------------------------------------------------------------------
# init + plain-JAX reference
# ---------------------------------------------------------------------------
def init_params(key, input_dim, hidden_dim, num_classes):
    """Kaiming-uniform-ish init mirroring nn.Linear; weights stored (in, out)."""
    k1, k2, k3, k4, k5, k6 = jax.random.split(key, 6)

    def lin(kw, kb, fan_in, fan_out):
        bound = 1.0 / jnp.sqrt(fan_in)
        w = jax.random.uniform(kw, (fan_in, fan_out), jnp.float32, -bound, bound)
        b = jax.random.uniform(kb, (1, fan_out), jnp.float32, -bound, bound)
        return w, b

    w1, b1 = lin(k1, k2, input_dim, hidden_dim)
    w2, b2 = lin(k3, k4, hidden_dim, hidden_dim)
    w3, b3 = lin(k5, k6, hidden_dim, num_classes)
    return w1, b1, w2, b2, w3, b3


def reference_mlp(x, w1, b1, w2, b2, w3, b3, compute_dtype=jnp.bfloat16):
    """Same arithmetic (bf16 MXU operands, f32 accumulation) in plain JAX."""
    cd = compute_dtype
    h = jnp.maximum(jnp.dot(x.astype(cd), w1.astype(cd),
                            preferred_element_type=jnp.float32) + b1, 0.0)
    h = jnp.maximum(jnp.dot(h.astype(cd), w2.astype(cd),
                            preferred_element_type=jnp.float32) + b2, 0.0)
    logits = jnp.dot(h.astype(cd), w3.astype(cd),
                     preferred_element_type=jnp.float32) + b3
    return jax.nn.softmax(logits, axis=1)


if __name__ == "__main__":
    # small shapes consistent with the module's forward: x is (batch, input_dim);
    # hidden_dim=200 matches the nn.Module default and exercises the padding path.
    batch, input_dim, hidden_dim, num_classes = 8, 32, 200, 16

    key = jax.random.PRNGKey(0)
    kx, kx2, kp = jax.random.split(key, 3)
    x = jax.random.normal(kx, (batch, input_dim), jnp.float32)
    params = init_params(kp, input_dim, hidden_dim, num_classes)

    forward = make_three_layer_mlp(*params)   # padding / bf16 cast happens ONCE here

    # tiny batch (single-block path)
    out = jax.block_until_ready(forward(x))
    ref = reference_mlp(x, *params)
    assert out.shape == (batch, num_classes)
    # bf16 operands + approx reciprocal -> few-1e-3 tolerance
    assert jnp.allclose(out, ref, atol=2e-3, rtol=2e-3), "mismatch vs reference (small batch)"
    assert jnp.allclose(jnp.sum(out, axis=1), 1.0, atol=5e-3), "softmax rows must sum to 1"

    # larger batch exercises the even-step tiled grid path (2 tiles here)
    batch2 = 100
    x2 = jax.random.normal(kx2, (batch2, input_dim), jnp.float32)
    out2 = jax.block_until_ready(forward(x2))
    ref2 = reference_mlp(x2, *params)
    assert out2.shape == (batch2, num_classes)
    assert jnp.allclose(out2, ref2, atol=2e-3, rtol=2e-3), "mismatch vs reference (tiled batch)"

    print("KERNEL_OK")
</pallas_src>

<mosaic_0001>
module attributes {stable_mosaic.version = 11 : i64} {
  func.func @mlp_kernel(%arg0: i32, %arg1: memref<16x128xbf16, #tpu.memory_space<vmem>>, %arg2: memref<128x256xbf16, #tpu.memory_space<vmem>>, %arg3: memref<1x256xf32, #tpu.memory_space<vmem>>, %arg4: memref<256x256xbf16, #tpu.memory_space<vmem>>, %arg5: memref<1x256xf32, #tpu.memory_space<vmem>>, %arg6: memref<256x128xbf16, #tpu.memory_space<vmem>>, %arg7: memref<1x128xf32, #tpu.memory_space<vmem>>, %arg8: memref<16x128xf32, #tpu.memory_space<vmem>>) attributes {dimension_semantics = [#tpu.dimension_semantics<parallel>], iteration_bounds = array<i64: 1>, scalar_prefetch = 0 : i64, scratch_operands = 0 : i64, tpu.core_type = #tpu.core_type<tc>, window_params = [{transform_indices = @transform_0, window_bounds = array<i64: 16, 128>}, {pipeline_mode = #tpu.pipeline_mode<synchronous>, transform_indices = @transform_1, window_bounds = array<i64: 128, 256>}, {pipeline_mode = #tpu.pipeline_mode<synchronous>, transform_indices = @transform_2, window_bounds = array<i64: 1, 256>}, {pipeline_mode = #tpu.pipeline_mode<synchronous>, transform_indices = @transform_3, window_bounds = array<i64: 256, 256>}, {pipeline_mode = #tpu.pipeline_mode<synchronous>, transform_indices = @transform_4, window_bounds = array<i64: 1, 256>}, {pipeline_mode = #tpu.pipeline_mode<synchronous>, transform_indices = @transform_5, window_bounds = array<i64: 256, 128>}, {pipeline_mode = #tpu.pipeline_mode<synchronous>, transform_indices = @transform_6, window_bounds = array<i64: 1, 128>}, {transform_indices = @transform_7, window_bounds = array<i64: 16, 128>}]} {
    %c0 = arith.constant 0 : index
    %c0_0 = arith.constant 0 : index
    %0 = vector.load %arg1[%c0, %c0_0] : memref<16x128xbf16, #tpu.memory_space<vmem>>, vector<16x128xbf16>
    %c0_1 = arith.constant 0 : index
    %c0_2 = arith.constant 0 : index
    %1 = vector.load %arg2[%c0_1, %c0_2] : memref<128x256xbf16, #tpu.memory_space<vmem>>, vector<128x256xbf16>
    %cst = arith.constant dense<0.000000e+00> : vector<16x256xf32>
    %2 = tpu.matmul %0, %1, %cst {dimension_numbers = #tpu.dot_dimension_numbers<[1], [0], [0], [1], [0, 0, 1, 1], [], []>} : vector<16x128xbf16>, vector<128x256xbf16>, vector<16x256xf32> -> vector<16x256xf32>
    %c0_3 = arith.constant 0 : index
    %c0_4 = arith.constant 0 : index
    %3 = vector.load %arg3[%c0_3, %c0_4] : memref<1x256xf32, #tpu.memory_space<vmem>>, vector<1x256xf32>
    %4 = vector.broadcast %3 : vector<1x256xf32> to vector<16x256xf32>
    %5 = arith.addf %2, %4 : vector<16x256xf32>
    %cst_5 = arith.constant 0.000000e+00 : f32
    %6 = vector.broadcast %cst_5 : f32 to vector<16x256xf32>
    %7 = arith.maximumf %5, %6 : vector<16x256xf32>
    %8 = arith.truncf %7 : vector<16x256xf32> to vector<16x256xbf16>
    %c0_6 = arith.constant 0 : index
    %c0_7 = arith.constant 0 : index
    %9 = vector.load %arg4[%c0_6, %c0_7] : memref<256x256xbf16, #tpu.memory_space<vmem>>, vector<256x256xbf16>
    %cst_8 = arith.constant dense<0.000000e+00> : vector<16x256xf32>
    %10 = tpu.matmul %8, %9, %cst_8 {dimension_numbers = #tpu.dot_dimension_numbers<[1], [0], [0], [1], [0, 0, 1, 1], [], []>} : vector<16x256xbf16>, vector<256x256xbf16>, vector<16x256xf32> -> vector<16x256xf32>
    %c0_9 = arith.constant 0 : index
    %c0_10 = arith.constant 0 : index
    %11 = vector.load %arg5[%c0_9, %c0_10] : memref<1x256xf32, #tpu.memory_space<vmem>>, vector<1x256xf32>
    %12 = vector.broadcast %11 : vector<1x256xf32> to vector<16x256xf32>
    %13 = arith.addf %10, %12 : vector<16x256xf32>
    %cst_11 = arith.constant 0.000000e+00 : f32
    %14 = vector.broadcast %cst_11 : f32 to vector<16x256xf32>
    %15 = arith.maximumf %13, %14 : vector<16x256xf32>
    %16 = arith.truncf %15 : vector<16x256xf32> to vector<16x256xbf16>
    %c0_12 = arith.constant 0 : index
    %c0_13 = arith.constant 0 : index
    %17 = vector.load %arg6[%c0_12, %c0_13] : memref<256x128xbf16, #tpu.memory_space<vmem>>, vector<256x128xbf16>
    %cst_14 = arith.constant dense<0.000000e+00> : vector<16x128xf32>
    %18 = tpu.matmul %16, %17, %cst_14 {dimension_numbers = #tpu.dot_dimension_numbers<[1], [0], [0], [1], [0, 0, 1, 1], [], []>} : vector<16x256xbf16>, vector<256x128xbf16>, vector<16x128xf32> -> vector<16x128xf32>
    %c0_15 = arith.constant 0 : index
    %c0_16 = arith.constant 0 : index
    %19 = vector.load %arg7[%c0_15, %c0_16] : memref<1x128xf32, #tpu.memory_space<vmem>>, vector<1x128xf32>
    %20 = vector.broadcast %19 : vector<1x128xf32> to vector<16x128xf32>
    %21 = arith.addf %18, %20 : vector<16x128xf32>
    %cst_17 = arith.constant dense<0xFF800000> : vector<16xf32>
    %22 = vector.multi_reduction <maximumf>, %21, %cst_17 [1] : vector<16x128xf32> to vector<16xf32>
    %23 = vector.shape_cast %22 : vector<16xf32> to vector<16x1xf32>
    %24 = vector.broadcast %23 : vector<16x1xf32> to vector<16x128xf32>
    %25 = arith.subf %21, %24 : vector<16x128xf32>
    %26 = math.exp %25 : vector<16x128xf32>
    %cst_18 = arith.constant dense<0.000000e+00> : vector<16xf32>
    %27 = vector.multi_reduction <add>, %26, %cst_18 [1] : vector<16x128xf32> to vector<16xf32>
    %28 = vector.shape_cast %27 : vector<16xf32> to vector<16x1xf32>
    %29 = tpu.reciprocal %28 {approx = true} : vector<16x1xf32> -> vector<16x1xf32>
    %30 = vector.broadcast %29 : vector<16x1xf32> to vector<16x128xf32>
    %31 = arith.mulf %26, %30 : vector<16x128xf32>
    %c0_19 = arith.constant 0 : index
    %c0_20 = arith.constant 0 : index
    %32 = vector.load %arg8[%c0_19, %c0_20] : memref<16x128xf32, #tpu.memory_space<vmem>>, vector<16x128xf32>
    tpu.vector_store %arg8[%c0_19, %c0_20], %31 {strides = array<i32>} : memref<16x128xf32, #tpu.memory_space<vmem>>, vector<16x128xf32>,
    return
  }
  func.func @transform_0(%arg0: i32) -> (i32, i32) {
    %c0_i32 = arith.constant 0 : i32
    %c0_i32_0 = arith.constant 0 : i32
    return %arg0, %c0_i32 : i32, i32
  }
  func.func @transform_1(%arg0: i32) -> (i32, i32) {
    %c0_i32 = arith.constant 0 : i32
    %c0_i32_0 = arith.constant 0 : i32
    %c0_i32_1 = arith.constant 0 : i32
    return %c0_i32, %c0_i32_0 : i32, i32
  }
  func.func @transform_2(%arg0: i32) -> (i32, i32) {
    %c0_i32 = arith.constant 0 : i32
    %c0_i32_0 = arith.constant 0 : i32
    %c0_i32_1 = arith.constant 0 : i32
    return %c0_i32, %c0_i32_0 : i32, i32
  }
  func.func @transform_3(%arg0: i32) -> (i32, i32) {
    %c0_i32 = arith.constant 0 : i32
    %c0_i32_0 = arith.constant 0 : i32
    %c0_i32_1 = arith.constant 0 : i32
    return %c0_i32, %c0_i32_0 : i32, i32
  }
  func.func @transform_4(%arg0: i32) -> (i32, i32) {
    %c0_i32 = arith.constant 0 : i32
    %c0_i32_0 = arith.constant 0 : i32
    %c0_i32_1 = arith.constant 0 : i32
    return %c0_i32, %c0_i32_0 : i32, i32
  }
  func.func @transform_5(%arg0: i32) -> (i32, i32) {
    %c0_i32 = arith.constant 0 : i32
    %c0_i32_0 = arith.constant 0 : i32
    %c0_i32_1 = arith.constant 0 : i32
    return %c0_i32, %c0_i32_0 : i32, i32
  }
  func.func @transform_6(%arg0: i32) -> (i32, i32) {
    %c0_i32 = arith.constant 0 : i32
    %c0_i32_0 = arith.constant 0 : i32
    %c0_i32_1 = arith.constant 0 : i32
    return %c0_i32, %c0_i32_0 : i32, i32
  }
  func.func @transform_7(%arg0: i32) -> (i32, i32) {
    %c0_i32 = arith.constant 0 : i32
    %c0_i32_0 = arith.constant 0 : i32
    return %arg0, %c0_i32 : i32, i32
  }
}

</mosaic_0001>

<bundles_post_ra>
// kernel: forward.1
= control target key start
LH: loop header
LB: loop body
LE: loop exit
PB: predicated region body
PF: predicated region fallthrough
CT: control target
= control target key end

     0   :  { %12 = vsyncpa [#allocation3], 0  ;;  %s1020_s0 = inlined_call_operand.vmem [shape: bf16[16,128], index: 0, kind: input, shape index: {}]   ;;  %s1021_s1 = inlined_call_operand.hbm [shape: bf16[128,256], index: 1, kind: input, shape index: {}]   ;;  %s1022_s2 = inlined_call_operand.vmem [shape: f32[1,256], index: 2, kind: input, shape index: {}]   ;;  %s1023_s3 = inlined_call_operand.hbm [shape: bf16[256,256], index: 3, kind: input, shape index: {}]   ;;  %s1024_s4 = inlined_call_operand.vmem [shape: f32[1,256], index: 4, kind: input, shape index: {}]   ;;  %s1025_s5 = inlined_call_operand.hbm [shape: bf16[256,128], index: 5, kind: input, shape index: {}]   ;;  %s1026_s6 = inlined_call_operand.vmem [shape: f32[1,128], index: 6, kind: input, shape index: {}]   ;;  %s1027_s7 = inlined_call_operand.vmem [shape: f32[16,128], index: 7, kind: output, shape index: {}]  }
   0x1   :  { %13 = vsyncpa [#allocation5], 0  ;;  %s945_s24 = smov [#allocation4]   ;;  %s946_s26 = smov [#allocation2]  }
   0x2   :  { %s35_s25 = sshll.u32 %s945_s24, 4  ;;  %s21_s27 = sshll.u32 %s946_s26, 4  ;;  %s36_s25 = int_to_ptr.vmem [resolvable:$true] %s35_s25  ;;  %s22_s27 = int_to_ptr.vmem [resolvable:$true] %s21_s27 }
   0x3   :  { %s889_s28 = scalar_lea.vmem %s36_s25, 4096  ;;  %p894_p1 = scmp.lt.s32.totalorder %s36_s25, %s36_s25 }
   0x4   :  { %p890_p0 = scmp.ne.s32.totalorder %s36_s25, %s889_s28  ;;  %p895_p2 = scmp.lt.s32.totalorder %s889_s28, %s889_s28 }
   0x6   :  { %p896_p3 = por %p895_p2, %p894_p1 }
   0x8   :  { %p897_p4 = pnand %p896_p3, %p890_p0 }
   0xa   :  { %900 = shalt.err (!%p897_p4)
}
   0xb   :  { %s947_s29 = smov 128   ;;  %s948_s30 = smov 8  }
   0xc   :  { %41 = dma.hbm_to_vmem [thread:$0]  %s1023_s3, 4096, %s36_s25, [#allocation5], %s947_s29, %s947_s29, %s948_s30  }
   0xd   :  { %s909_s10 = scalar_lea.vmem %s22_s27, 2048  ;;  %p914_p6 = scmp.lt.s32.totalorder %s22_s27, %s22_s27 }
   0xe   :  { %p910_p5 = scmp.ne.s32.totalorder %s22_s27, %s909_s10  ;;  %p915_p7 = scmp.lt.s32.totalorder %s909_s10, %s909_s10 }
  0x10   :  { %p916_p8 = por %p915_p7, %p914_p6 }
  0x12   :  { %p917_p9 = pnand %p916_p8, %p910_p5 }
  0x14   :  { %920 = shalt.err (!%p917_p9)
}
  0x15   :  { %27 = dma.hbm_to_vmem [thread:$0]  %s1021_s1, 2048, %s22_s27, [#allocation3], %s947_s29, %s947_s29, %s948_s30  }
  0x16   :  { %s949_s13 = smov [#allocation6]  }
  0x17   :  { %s49_s14 = sshll.u32 %s949_s13, 4  ;;  %s50_s14 = int_to_ptr.vmem [resolvable:$true] %s49_s14 }
  0x18   :  { %s929_s15 = scalar_lea.vmem %s50_s14, 2048  ;;  %p934_p11 = scmp.lt.s32.totalorder %s50_s14, %s50_s14 }
  0x19   :  { %p930_p10 = scmp.ne.s32.totalorder %s50_s14, %s929_s15  ;;  %p935_p12 = scmp.lt.s32.totalorder %s929_s15, %s929_s15 }
  0x1b   :  { %p936_p13 = por %p935_p12, %p934_p11 }
  0x1d   :  { %p937_p0 = pnand %p936_p13, %p930_p10 }
  0x1f   :  { %940 = shalt.err (!%p937_p0)
}
  0x20   :  { %s950_s3 = smov 64   ;;  %s951_s16 = smov 4  }
  0x21   :  { %55 = dma.hbm_to_vmem [thread:$0]  %s1025_s5, 2048, %s50_s14, [#allocation5], %s950_s3, %s950_s3, %s951_s16  }
  0x22   :  { %941 = dma.done.wait [#allocation3], 2048  }
  0x23   :  { %942 = vsyncadd [#allocation3], 4294965248 }
  0x24   :  { %943 = dma.done.wait [#allocation5], 6144  }
  0x25   :  { %944 = vsyncadd [#allocation5], 4294961152  ;;  %v952_v0 = vmov 0   ;;  %v784_v1 = vld [vmem:[#allocation2 + $0x74] ss:$8 sps:$4 sm:$0xff]   ;;  %v808_v27 = vld [vmem:[%s1020_s0] sm:$0xff]   ;;  %v88_v60 = vlaneseq }
  0x26   :  { %216 = vmatprep.mubr.bf16.mxu0 %v952_v0  ;;  %v786_v2 = vld [vmem:[#allocation2 + $0x70] ss:$8 sps:$4 sm:$0xff]   ;;  %184 = vmatprep.subr.bf16.mxu0 %v784_v1  ;;  %v787_v3 = vld [vmem:[#allocation2 + $0x64] ss:$8 sps:$4 sm:$0xff]   ;;  %v789_v4 = vld [vmem:[#allocation2 + $0x60] ss:$8 sps:$4 sm:$0xff]  }
  0x27   :  { %185 = vmatpush1.bf16.msra.mxu0 %v786_v2  ;;  %v790_v5 = vld [vmem:[#allocation2 + $0x54] ss:$8 sps:$4 sm:$0xff]   ;;  %v792_v6 = vld [vmem:[#allocation2 + $0x50] ss:$8 sps:$4 sm:$0xff]   ;;  %v793_v7 = vld [vmem:[#allocation2 + $0x44] ss:$8 sps:$4 sm:$0xff]  }
  0x28   :  { %186 = vmatprep.subr.bf16.mxu0 %v787_v3  ;;  %v795_v8 = vld [vmem:[#allocation2 + $0x40] ss:$8 sps:$4 sm:$0xff]   ;;  %v796_v9 = vld [vmem:[#allocation2 + $0x34] ss:$8 sps:$4 sm:$0xff]   ;;  %v811_v11 = vld [vmem:[#allocation4 + $0x70] ss:$8 sps:$4 sm:$0xff]  }
  0x29   :  { %v809_v10 = vld [vmem:[#allocation4 + $0x74] ss:$8 sps:$4 sm:$0xff]   ;;  %v812_v12 = vld [vmem:[#allocation4 + $0x64] ss:$8 sps:$4 sm:$0xff]   ;;  %v798_v13 = vld [vmem:[#allocation2 + $0x30] ss:$8 sps:$4 sm:$0xff]  }
  0x2a   :  { %437 = vmatprep.subr.bf16.mxu1 %v809_v10  ;;  %v814_v14 = vld [vmem:[#allocation4 + $0x60] ss:$8 sps:$4 sm:$0xff]   ;;  %v799_v15 = vld [vmem:[#allocation2 + $0x24] ss:$8 sps:$4 sm:$0xff]   ;;  %v815_v16 = vld [vmem:[#allocation4 + $0x54] ss:$8 sps:$4 sm:$0xff]  }
  0x2b   :  { %187 = vmatpush1.bf16.msra.mxu0 %v789_v4  ;;  %438 = vmatpush1.bf16.msra.mxu1 %v811_v11  ;;  %v801_v17 = vld [vmem:[#allocation2 + $0x20] ss:$8 sps:$4 sm:$0xff]   ;;  %v817_v18 = vld [vmem:[#allocation4 + $0x50] ss:$8 sps:$4 sm:$0xff]   ;;  %v802_v19 = vld [vmem:[#allocation2 + $0x14] ss:$8 sps:$4 sm:$0xff]  }
  0x2c   :  { %188 = vmatprep.subr.bf16.mxu0 %v790_v5  ;;  %439 = vmatprep.subr.bf16.mxu1 %v812_v12  ;;  %v818_v20 = vld [vmem:[#allocation4 + $0x44] ss:$8 sps:$4 sm:$0xff]   ;;  %v804_v21 = vld [vmem:[#allocation2 + $0x10] ss:$8 sps:$4 sm:$0xff]   ;;  %v820_v22 = vld [vmem:[#allocation4 + $0x40] ss:$8 sps:$4 sm:$0xff]  }
  0x2d   :  { %v805_v23 = vld [vmem:[#allocation2 + $0x4] ss:$8 sps:$4 sm:$0xff]   ;;  %v821_v24 = vld [vmem:[#allocation4 + $0x34] ss:$8 sps:$4 sm:$0xff]   ;;  %v807_v25 = vld [vmem:[#allocation2] ss:$8 sps:$4 sm:$0xff]  }
  0x2e   :  { %v823_v26 = vld [vmem:[#allocation4 + $0x30] ss:$8 sps:$4 sm:$0xff]   ;;  %v824_v28 = vld [vmem:[#allocation4 + $0x24] ss:$8 sps:$4 sm:$0xff]   ;;  %v826_v29 = vld [vmem:[#allocation4 + $0x20] ss:$8 sps:$4 sm:$0xff]  }
  0x2f   :  { %189 = vmatpush1.bf16.msra.mxu0 %v792_v6  ;;  %440 = vmatpush1.bf16.msra.mxu1 %v814_v14  ;;  %v827_v30 = vld [vmem:[#allocation4 + $0x14] ss:$8 sps:$4 sm:$0xff]   ;;  %v829_v31 = vld [vmem:[#allocation4 + $0x10] ss:$8 sps:$4 sm:$0xff]   ;;  %v830_v32 = vld [vmem:[#allocation4 + $0x4] ss:$8 sps:$4 sm:$0xff]  }
  0x30   :  { %190 = vmatprep.subr.bf16.mxu0 %v793_v7  ;;  %441 = vmatprep.subr.bf16.mxu1 %v815_v16  ;;  %v832_v33 = vld [vmem:[#allocation4] ss:$8 sps:$4 sm:$0xff]   ;;  %v833_v34 = vld [vmem:[#allocation4 + $0xf4] ss:$8 sps:$4 sm:$0xff]   ;;  %v835_v35 = vld [vmem:[#allocation4 + $0xf0] ss:$8 sps:$4 sm:$0xff]  }
  0x31   :  { %v836_v36 = vld [vmem:[#allocation4 + $0xe4] ss:$8 sps:$4 sm:$0xff]   ;;  %v838_v37 = vld [vmem:[#allocation4 + $0xe0] ss:$8 sps:$4 sm:$0xff]   ;;  %v839_v38 = vld [vmem:[#allocation4 + $0xd4] ss:$8 sps:$4 sm:$0xff]  }
  0x32   :  { %v841_v39 = vld [vmem:[#allocation4 + $0xd0] ss:$8 sps:$4 sm:$0xff]   ;;  %v842_v40 = vld [vmem:[#allocation4 + $0xc4] ss:$8 sps:$4 sm:$0xff]   ;;  %v844_v41 = vld [vmem:[#allocation4 + $0xc0] ss:$8 sps:$4 sm:$0xff]  }
  0x33   :  { %191 = vmatpush1.bf16.msra.mxu0 %v795_v8  ;;  %442 = vmatpush1.bf16.msra.mxu1 %v817_v18  ;;  %v845_v42 = vld [vmem:[#allocation4 + $0xb4] ss:$8 sps:$4 sm:$0xff]   ;;  %v847_v43 = vld [vmem:[#allocation4 + $0xb0] ss:$8 sps:$4 sm:$0xff]   ;;  %v848_v44 = vld [vmem:[#allocation4 + $0xa4] ss:$8 sps:$4 sm:$0xff]  }
  0x34   :  { %192 = vmatprep.subr.bf16.mxu0 %v796_v9  ;;  %443 = vmatprep.subr.bf16.mxu1 %v818_v20  ;;  %v850_v45 = vld [vmem:[#allocation4 + $0xa0] ss:$8 sps:$4 sm:$0xff]   ;;  %v851_v46 = vld [vmem:[#allocation4 + $0x94] ss:$8 sps:$4 sm:$0xff]   ;;  %v853_v47 = vld [vmem:[#allocation4 + $0x90] ss:$8 sps:$4 sm:$0xff]  }
  0x35   :  { %v854_v48 = vld [vmem:[#allocation4 + $0x84] ss:$8 sps:$4 sm:$0xff]   ;;  %v856_v49 = vld [vmem:[#allocation4 + $0x80] ss:$8 sps:$4 sm:$0xff]   ;;  %v857_v50 = vld [vmem:[#allocation6 + $0x78] sm:$0xff]   ;;  %v89_v61 = vshrl.u32 %v88_v60, 7 }
  0x36   :  { %v858_v51 = vld [vmem:[#allocation6 + $0x38] sm:$0xff]   ;;  %v859_v52 = vld [vmem:[#allocation6 + $0x70] sm:$0xff]   ;;  %v861_v54 = vld [vmem:[#allocation6 + $0x68] sm:$0xff]  }
  0x37   :  { %193 = vmatpush1.bf16.msra.mxu0 %v798_v13  ;;  %444 = vmatpush1.bf16.msra.mxu1 %v820_v22  ;;  %v860_v53 = vld [vmem:[#allocation6 + $0x30] sm:$0xff]   ;;  %v862_v55 = vld [vmem:[#allocation6 + $0x28] sm:$0xff]   ;;  %v863_v56 = vld [vmem:[#allocation6 + $0x60] sm:$0xff]   ;;  %v94_v62 = vsub.s32 1, %v89_v61  ;;  %v90_v63 = vsub.s32 0, %v89_v61 }
  0x38   :  { %194 = vmatprep.subr.bf16.mxu0 %v799_v15  ;;  %445 = vmatprep.subr.bf16.mxu1 %v821_v24  ;;  %v864_v57 = vld [vmem:[#allocation6 + $0x20] sm:$0xff]   ;;  %v865_v58 = vld [vmem:[#allocation6 + $0x58] sm:$0xff]   ;;  %v868_v18 = vld [vmem:[#allocation6 + $0x10] sm:$0xff]  }
  0x39   :  { %v866_v59 = vld [vmem:[#allocation6 + $0x18] sm:$0xff]   ;;  %v86_v0 = vld [vmem:[%s1022_s2] sm:$0x3]  ;;  %v870_v20 = vld [vmem:[#allocation6 + $0x8] sm:$0xff]  }
  0x3a   :  { %v95_v2 = vrot.slane %v86_v0, %v94_v62  ;;  %v91_v3 = vrot.slane %v86_v0, %v90_v63  ;;  %v872_v22 = vld [vmem:[#allocation6] sm:$0xff]  }
  0x3b   :  { %195 = vmatpush1.bf16.msra.mxu0 %v801_v17  ;;  %446 = vmatpush1.bf16.msra.mxu1 %v823_v26  ;;  %v867_v17 = vld [vmem:[#allocation6 + $0x50] sm:$0xff]  }
  0x3c   :  { %196 = vmatprep.subr.bf16.mxu0 %v802_v19  ;;  %447 = vmatprep.subr.bf16.mxu1 %v824_v28  ;;  %v869_v19 = vld [vmem:[#allocation6 + $0x48] sm:$0xff]  }
  0x3f   :  { %197 = vmatpush1.bf16.msra.mxu0 %v804_v21  ;;  %448 = vmatpush1.bf16.msra.mxu1 %v826_v29  ;;  %v871_v21 = vld [vmem:[#allocation6 + $0x40] sm:$0xff]  }
  0x40   :  { %198 = vmatprep.subr.bf16.mxu0 %v805_v23  ;;  %449 = vmatprep.subr.bf16.mxu1 %v827_v30  ;;  %v265_v23 = vld [vmem:[%s1024_s4] sm:$0x3] }
  0x41   :  { %v270_v26 = vrot.slane %v265_v23, %v90_v63 }
  0x43   :  { %199 = vmatpush1.bf16.msra.mxu0 %v807_v25  ;;  %450 = vmatpush1.bf16.msra.mxu1 %v829_v31  ;;  %v274_v25 = vrot.slane %v265_v23, %v94_v62 }
  0x44   :  { %451 = vmatprep.subr.bf16.mxu1 %v830_v32  ;;  %754 = vmatprep.subr.bf16.mxu0 %v857_v50 }
  0x46   :  { %217 = vmatmul.mubr.bf16.vlgmr.msra.gmra.mxu0 %v808_v27 }
  0x47   :  { %452 = vmatpush1.bf16.msra.mxu1 %v832_v33  ;;  %755 = vmatpush3.bf16.msra.mxu0 %v858_v51 }
  0x48   :  { %453 = vmatprep.subr.bf16.mxu1 %v833_v34  ;;  %756 = vmatprep.subr.bf16.mxu0 %v859_v52 }
  0x4b   :  { %454 = vmatpush2.bf16.msra.mxu1 %v835_v35  ;;  %757 = vmatpush3.bf16.msra.mxu0 %v860_v53 }
  0x4c   :  { %455 = vmatprep.subr.bf16.mxu1 %v836_v36  ;;  %758 = vmatprep.subr.bf16.mxu0 %v861_v54 }
  0x4f   :  { %456 = vmatpush2.bf16.msra.mxu1 %v838_v37  ;;  %759 = vmatpush3.bf16.msra.mxu0 %v862_v55 }
  0x50   :  { %457 = vmatprep.subr.bf16.mxu1 %v839_v38  ;;  %760 = vmatprep.subr.bf16.mxu0 %v863_v56 }
  0x53   :  { %458 = vmatpush2.bf16.msra.mxu1 %v841_v39  ;;  %761 = vmatpush3.bf16.msra.mxu0 %v864_v57 }
  0x54   :  { %459 = vmatprep.subr.bf16.mxu1 %v842_v40  ;;  %762 = vmatprep.subr.bf16.mxu0 %v865_v58 }
  0x57   :  { %460 = vmatpush2.bf16.msra.mxu1 %v844_v41  ;;  %763 = vmatpush3.bf16.msra.mxu0 %v866_v59 }
  0x58   :  { %461 = vmatprep.subr.bf16.mxu1 %v845_v42  ;;  %764 = vmatprep.subr.bf16.mxu0 %v867_v17  ;;  %v737_v42 = vld [vmem:[%s1026_s6] ss:$0 sm:$0xff] }
  0x5b   :  { %462 = vmatpush2.bf16.msra.mxu1 %v847_v43  ;;  %765 = vmatpush3.bf16.msra.mxu0 %v868_v18 }
  0x5c   :  { %463 = vmatprep.subr.bf16.mxu1 %v848_v44  ;;  %766 = vmatprep.subr.bf16.mxu0 %v869_v19 }
  0x5f   :  { %464 = vmatpush2.bf16.msra.mxu1 %v850_v45  ;;  %767 = vmatpush3.bf16.msra.mxu0 %v870_v20 }
  0x60   :  { %465 = vmatprep.subr.bf16.mxu1 %v851_v46  ;;  %768 = vmatprep.subr.bf16.mxu0 %v871_v21 }
  0x63   :  { %466 = vmatpush2.bf16.msra.mxu1 %v853_v47  ;;  %769 = vmatpush3.bf16.msra.mxu0 %v872_v22 }
  0x64   :  { %467 = vmatprep.subr.bf16.mxu1 %v854_v48 }
  0x67   :  { %468 = vmatpush2.bf16.msra.mxu1 %v856_v49 }
 0x106   :  { %v218_v1 = vpop.f32.mrf.mxu0 }
 0x107   :  { %v219_v8 = vadd.f32 %v218_v1, %v91_v3 }
 0x108   :  { %v220_v4 = vpop.f32.mrf.mxu0 }
 0x109   :  { %v221_v6 = vadd.f32 %v220_v4, %v95_v2  ;;  %v227_v14 = vmax.f32 %v219_v8, 0.0 }
 0x10a   :  { %v222_v5 = vpop.f32.mrf.mxu0 }
 0x10b   :  { %v223_v7 = vadd.f32 %v222_v5, %v91_v3  ;;  %v228_v12 = vmax.f32 %v221_v6, 0.0 }
 0x10c   :  { %v224_v9 = vpop.f32.mrf.mxu0 }
 0x10d   :  { %v225_v10 = vadd.f32 %v224_v9, %v95_v2  ;;  %v229_v11 = vmax.f32 %v223_v7, 0.0 }
 0x10f   :  { %v230_v13 = vmax.f32 %v225_v10, 0.0  ;;  %v231_v16 = vpack.c.bf16 %v229_v11, %v227_v14 }
 0x111   :  { %v232_v15 = vpack.c.bf16 %v230_v13, %v228_v12 }
 0x113   :  { %469 = vmatprep.mubr.bf16.mxu1 %v232_v15 }
 0x114   :  { %470 = vmatmul.mubr.bf16.vlgmr.msra.gmra.mxu1 %v231_v16 }
 0x1d4   :  { %v471_v24 = vpop.f32.mrf.mxu1 }
 0x1d5   :  { %v472_v31 = vadd.f32 %v471_v24, %v270_v26 }
 0x1d6   :  { %v473_v27 = vpop.f32.mrf.mxu1 }
 0x1d7   :  { %v474_v29 = vadd.f32 %v473_v27, %v274_v25  ;;  %v480_v37 = vmax.f32 %v472_v31, 0.0 }
 0x1d8   :  { %v475_v28 = vpop.f32.mrf.mxu1 }
 0x1d9   :  { %v476_v30 = vadd.f32 %v475_v28, %v270_v26  ;;  %v481_v35 = vmax.f32 %v474_v29, 0.0 }
 0x1da   :  { %v477_v32 = vpop.f32.mrf.mxu1 }
 0x1db   :  { %v478_v33 = vadd.f32 %v477_v32, %v274_v25  ;;  %v482_v34 = vmax.f32 %v476_v30, 0.0 }
 0x1dd   :  { %v483_v36 = vmax.f32 %v478_v33, 0.0  ;;  %v484_v39 = vpack.c.bf16 %v482_v34, %v480_v37 }
 0x1df   :  { %v485_v38 = vpack.c.bf16 %v483_v36, %v481_v35 }
 0x1e1   :  { %653 = vmatprep.mubr.bf16.mxu0 %v485_v38 }
 0x1e2   :  { %654 = vmatmul.mubr.bf16.vlgmr.msra.gmra.mxu0 %v484_v39 }
 0x2a2   :  { %v770_v40 = vpop.f32.mrf.mxu0 }
 0x2a4   :  { %v771_v41 = vpop.f32.mrf.mxu0 }
 0x2a5   :  { %v772_v43 = vadd.f32 %v771_v41, %v770_v40 }
 0x2a6   :  { %v773_v44 = vpop.f32.mrf.mxu0 }
 0x2a7   :  { %v656_v45 = vadd.f32 %v772_v43, %v737_v42 }
 0x2a8   :  { %v774_v46 = vpop.f32.mrf.mxu0 }
 0x2a9   :  { %v775_v47 = vadd.f32 %v774_v46, %v773_v44  ;;  %662 = vmax.xlane.f32.xlu0 %v656_v45 }
 0x2ab   :  { %v659_v48 = vadd.f32 %v775_v47, %v737_v42 }
 0x2ad   :  { %664 = vmax.xlane.f32.xlu0 %v659_v48 }
 0x332   :  { %v663_v49 = vpop.xlane.xlu0 %662 }
 0x333   :  { %v666_v50 = vsub.f32 %v656_v45, %v663_v49 }
 0x335   :  { %v668_v51 = vmul.f32 1.442695, %v666_v50 }
 0x336   :  { %v665_v52 = vpop.xlane.xlu0 %664 }
 0x337   :  { %873 = vpow2.f32 %v668_v51  ;;  %v667_v53 = vsub.f32 %v659_v48, %v665_v52 }
 0x339   :  { %v670_v54 = vmul.f32 1.442695, %v667_v53 }
 0x33b   :  { %875 = vpow2.f32 %v670_v54 }
 0x344   :  { %v874_v55 = vpop.eup %873 }
 0x345   :  { %672 = vadd.xlane.f32.xlu1 %v874_v55 }
 0x348   :  { %v876_v56 = vpop.eup %875 }
 0x349   :  { %674 = vadd.xlane.f32.xlu1 %v876_v56 }
 0x3ce   :  { %v673_v57 = vpop.xlane.xlu1 %672 }
 0x3cf   :  { %877 = vrcp.f32 %v673_v57 }
 0x3d2   :  { %v675_v58 = vpop.xlane.xlu1 %674 }
 0x3d3   :  { %879 = vrcp.f32 %v675_v58 }
 0x3dc   :  { %v878_v59 = vpop.eup %877 }
 0x3dd   :  { %v678_v60 = vmul.f32 %v878_v59, %v874_v55 }
 0x3df   :  { %680 = vst [vmem:[%s1027_s7] sm:$0xff] %v678_v60 }
 0x3e0   :  { %v880_v61 = vpop.eup %879 }
 0x3e1   :  { %v679_v62 = vmul.f32 %v880_v61, %v876_v56 }
 0x3e3   :  { %681 = vst [vmem:[%s1027_s7 + $0x8] sm:$0xff] %v679_v62 }
 0x3e4   :  { %686 = vsyncpa [#allocation3], 1 }
 0x3e5   :  { %687 = vsyncpa [#allocation5], 1 }

</bundles_post_ra>
